<compile_context>
chip_gen: v6e
topology: v6e:2x2x1
jax: 0.10.0
libtpu: 0.0.40
codegen_flags: <defaults>
</compile_context>

<pallas_src>
import jax
import jax.numpy as jnp
import numpy as np
from jax.experimental import pallas as pl
from jax.experimental.pallas import tpu as pltpu

# ---------------- config (deterministic, small) ----------------
NUM_ENTITIES = 16
NUM_RELATIONS = 8
EMBEDDING_DIM = 32
BATCH = 8
MARGIN_LOSS = 1.0
WEIGHT_SOFT = 0.05
EPSILON = 0.05
SCORING_FCT_NORM = 2.0  # p of torch.norm in _compute_scores


# ---------------- fused kernel: one-hot MXU gather + renorm + scores + loss ----------------
def _transh_fused_kernel(idx_ref,                               # VMEM (2B,3) int32: pos rows then neg rows
                         ent_ref, rel_ref, nrm_ref, prj_ref,    # VMEM (E,D)/(R,D) f32 tables (dense 2-D)
                         loss_ref):                             # SMEM (1,1) f32 output
    two_b = idx_ref.shape[0]
    bsz = two_b // 2
    E, D = ent_ref.shape
    R = rel_ref.shape[0]

    ent = ent_ref[...]                                           # (E,D)
    rel = rel_ref[...]                                           # (R,D)
    nrm = nrm_ref[...]                                           # (R,D)
    prj = prj_ref[...]                                           # (R,D)

    # --- hyperplane-normal renormalization (rsqrt -> EUP, lane reduce -> XLU) ---
    # TODO(synk): torch mutates normal_vector_embeddings.weight in-place; here the
    # renormalized table is used in-kernel but not written back to HBM.
    nrm_n = nrm * jax.lax.rsqrt(jnp.sum(nrm * nrm, axis=1, keepdims=True))

    # --- one-hot MXU gather of both batches at once (indices stay vector-valued) ---
    idx = idx_ref[...]                                           # (2B,3) i32
    h_id = idx[:, 0:1]
    r_id = idx[:, 1:2]
    t_id = idx[:, 2:3]

    ent_iota = jax.lax.broadcasted_iota(jnp.int32, (two_b, E), 1)
    rel_iota = jax.lax.broadcasted_iota(jnp.int32, (two_b, R), 1)
    # H - T in one matmul: coefficients in {-1, 0, +1}
    oh_hmt = (h_id == ent_iota).astype(jnp.float32) - (t_id == ent_iota).astype(jnp.float32)
    oh_r = (r_id == rel_iota).astype(jnp.float32)

    hmt = jnp.dot(oh_hmt, ent, preferred_element_type=jnp.float32,
                  precision=jax.lax.Precision.HIGHEST)           # (2B,D)  H - T   (exact gather)
    r_emb = jnp.dot(oh_r, rel, preferred_element_type=jnp.float32,
                    precision=jax.lax.Precision.HIGHEST)         # (2B,D)  R
    n_emb = jnp.dot(oh_r, nrm_n, preferred_element_type=jnp.float32,
                    precision=jax.lax.Precision.HIGHEST)         # (2B,D)  renormalized N

    a = hmt + r_emb                                              # A[i,d] = H + R - T
    c = n_emb * hmt                                              # C[i,d] = N * (H - T)

    # --- scores[i,d] = ( sum_j |A[i,d] - C[j,d]|^p )^(1/p) per batch half ---
    def scores(a_h, c_h):                                        # (B,D) register values
        if SCORING_FCT_NORM == 2.0:
            # closed form: sum_j (A-C)^2 = B*A^2 - 2*A*S1 + S2 (two sublane reductions)
            s1 = jnp.sum(c_h, axis=0, keepdims=True)             # (1,D)
            s2 = jnp.sum(c_h * c_h, axis=0, keepdims=True)       # (1,D)
            sq = float(bsz) * a_h * a_h - 2.0 * a_h * s1 + s2
            return jnp.sqrt(jnp.maximum(sq, 0.0))                # guard fp round-off
        # generic-p fallback (not exercised for p=2): static sublane slices of a value
        acc = jnp.zeros_like(a_h)
        for j in range(bsz):
            diff = jnp.abs(a_h - c_h[j:j + 1, :])
            acc = acc + (diff if SCORING_FCT_NORM == 1.0 else diff ** SCORING_FCT_NORM)
        return acc if SCORING_FCT_NORM == 1.0 else acc ** (1.0 / SCORING_FCT_NORM)

    pos_s = scores(a[:bsz], c[:bsz])                             # (B,D) == pos scores.view(-1)
    neg_s = scores(a[bsz:], c[bsz:])

    # --- MarginRankingLoss(y=-1, reduction='sum') ---
    margin_term = jnp.sum(jnp.maximum(pos_s - neg_s + MARGIN_LOSS, 0.0))

    # --- soft constraints (dense 2-D tables -> one lane reduce each) ---
    entity_c = jnp.sum(jnp.abs(jnp.sum(ent * ent, axis=1, keepdims=True) - float(NUM_ENTITIES)))

    num = jnp.sum(nrm_n * prj, axis=1, keepdims=True)            # (R,1) uses renormalized normals
    num = num * num
    den = jnp.sum(prj * prj, axis=1, keepdims=True)
    # NOTE: no epsilon guard on `den` -- matches the torch module exactly.
    ortho_c = jnp.sum(jnp.abs(num / den - float(NUM_RELATIONS) * EPSILON))

    loss_ref[0, 0] = margin_term + WEIGHT_SOFT * (entity_c + ortho_c)


# ---------------- wrapper: one pallas_call, scalar loss out ----------------
def transh_forward(params, batch_positives, batch_negatives):
    ent_w = params["entity"]          # (E, D)
    rel_w = params["relation"]        # (R, D)
    prj_w = params["proj_relation"]   # (R, D)
    nrm_w = params["normal"]          # (R, D)

    E, D = ent_w.shape
    R, _ = rel_w.shape
    B = batch_positives.shape[0]

    # pos rows then neg rows; the cheap concat happens once in XLA, not in-kernel.
    idx = jnp.concatenate(
        [batch_positives.astype(jnp.int32), batch_negatives.astype(jnp.int32)], axis=0
    )                                                            # (2B, 3)

    out = pl.pallas_call(
        _transh_fused_kernel,
        out_shape=jax.ShapeDtypeStruct((1, 1), jnp.float32),
        grid_spec=pltpu.PrefetchScalarGridSpec(
            num_scalar_prefetch=0,
            grid=(1,),
            in_specs=[
                pl.BlockSpec((2 * B, 3), lambda i: (0, 0)),      # stacked triples (int32)
                pl.BlockSpec((E, D), lambda i: (0, 0)),          # entity table (dense 2-D)
                pl.BlockSpec((R, D), lambda i: (0, 0)),          # relation table
                pl.BlockSpec((R, D), lambda i: (0, 0)),          # normal-vector table
                pl.BlockSpec((R, D), lambda i: (0, 0)),          # projected-relation table
            ],
            out_specs=pl.BlockSpec(memory_space=pltpu.MemorySpace.SMEM),
        ),
        compiler_params=pltpu.CompilerParams(
            dimension_semantics=("arbitrary",),
        ),
    )(idx, ent_w, rel_w, nrm_w, prj_w)
    return out[0, 0]


# ---------------- numpy reference mimicking torch exactly ----------------
def reference_forward(params, pos, neg):
    ent = np.asarray(params["entity"], dtype=np.float64)
    rel = np.asarray(params["relation"], dtype=np.float64)
    prj = np.asarray(params["proj_relation"], dtype=np.float64)
    nrm = np.asarray(params["normal"], dtype=np.float64)
    pos = np.asarray(pos)
    neg = np.asarray(neg)
    p = SCORING_FCT_NORM

    nrm = nrm / np.linalg.norm(nrm, axis=1, keepdims=True)

    def scores(batch):
        h = ent[batch[:, 0:1]]          # (B,1,D)
        r = rel[batch[:, 1:2]]          # (B,1,D)
        t = ent[batch[:, 2:3]]          # (B,1,D)
        n = nrm[batch[:, 1:2]]          # (B,1,D)
        ph = h - np.sum(n * h, axis=1)  # (B,1,D) - (B,D) -> (B,B,D)
        pt = t - np.sum(n * t, axis=1)
        s = ph + r - pt                 # (B,B,D)
        sc = np.power(np.sum(np.abs(s) ** p, axis=1), 1.0 / p)  # (B,D)
        return sc.reshape(-1)

    ps = scores(pos)
    ns = scores(neg)
    mrl = np.sum(np.maximum(0.0, (ps - ns) + MARGIN_LOSS))
    ent_norm = np.linalg.norm(ent, axis=1)
    entity_c = np.sum(np.abs(ent_norm * ent_norm - NUM_ENTITIES * 1.0))
    num = np.sum(nrm * prj, axis=1)
    num = num * num
    den = np.linalg.norm(prj, axis=1) ** 2
    ortho_c = np.sum(np.abs(num / den - NUM_RELATIONS * EPSILON))
    return mrl + WEIGHT_SOFT * (entity_c + ortho_c)


if __name__ == "__main__":
    key = jax.random.PRNGKey(0)
    k_ent, k_rel, k_prj, k_nrm, k_ph, k_pr, k_pt, k_nh, k_nr, k_nt = jax.random.split(key, 10)

    # nn.Embedding default init ~ N(0, 1)
    params = {
        "entity": jax.random.normal(k_ent, (NUM_ENTITIES, EMBEDDING_DIM), jnp.float32),
        "relation": jax.random.normal(k_rel, (NUM_RELATIONS, EMBEDDING_DIM), jnp.float32),
        "proj_relation": jax.random.normal(k_prj, (NUM_RELATIONS, EMBEDDING_DIM), jnp.float32),
        "normal": jax.random.normal(k_nrm, (NUM_RELATIONS, EMBEDDING_DIM), jnp.float32),
    }

    batch_positives = jnp.stack(
        [
            jax.random.randint(k_ph, (BATCH,), 0, NUM_ENTITIES),
            jax.random.randint(k_pr, (BATCH,), 0, NUM_RELATIONS),
            jax.random.randint(k_pt, (BATCH,), 0, NUM_ENTITIES),
        ],
        axis=1,
    ).astype(jnp.int32)
    batch_negatives = jnp.stack(
        [
            jax.random.randint(k_nh, (BATCH,), 0, NUM_ENTITIES),
            jax.random.randint(k_nr, (BATCH,), 0, NUM_RELATIONS),
            jax.random.randint(k_nt, (BATCH,), 0, NUM_ENTITIES),
        ],
        axis=1,
    ).astype(jnp.int32)

    loss = jax.jit(transh_forward)(params, batch_positives, batch_negatives)
    loss = jax.block_until_ready(loss)

    ref = reference_forward(params, batch_positives, batch_negatives)
    np.testing.assert_allclose(np.asarray(loss, dtype=np.float64), ref, rtol=2e-3, atol=2e-3)

    print("KERNEL_OK")
</pallas_src>

<mosaic_0001>
module attributes {stable_mosaic.version = 11 : i64} {
  func.func @_transh_fused_kernel(%arg0: i32, %arg1: memref<16x3xi32, #tpu.memory_space<vmem>>, %arg2: memref<16x32xf32, #tpu.memory_space<vmem>>, %arg3: memref<8x32xf32, #tpu.memory_space<vmem>>, %arg4: memref<8x32xf32, #tpu.memory_space<vmem>>, %arg5: memref<8x32xf32, #tpu.memory_space<vmem>>, %arg6: memref<1x1xf32, #tpu.memory_space<smem>>) attributes {dimension_semantics = [#tpu.dimension_semantics<arbitrary>], iteration_bounds = array<i64: 1>, scalar_prefetch = 0 : i64, scratch_operands = 0 : i64, tpu.core_type = #tpu.core_type<tc>, window_params = [{pipeline_mode = #tpu.pipeline_mode<synchronous>, transform_indices = @transform_0, window_bounds = array<i64: 16, 3>}, {pipeline_mode = #tpu.pipeline_mode<synchronous>, transform_indices = @transform_1, window_bounds = array<i64: 16, 32>}, {pipeline_mode = #tpu.pipeline_mode<synchronous>, transform_indices = @transform_2, window_bounds = array<i64: 8, 32>}, {pipeline_mode = #tpu.pipeline_mode<synchronous>, transform_indices = @transform_3, window_bounds = array<i64: 8, 32>}, {pipeline_mode = #tpu.pipeline_mode<synchronous>, transform_indices = @transform_4, window_bounds = array<i64: 8, 32>}, {transform_indices = @transform_5, window_bounds = array<i64: 1, 1>}]} {
    %c0 = arith.constant 0 : index
    %c0_0 = arith.constant 0 : index
    %0 = vector.load %arg2[%c0, %c0_0] : memref<16x32xf32, #tpu.memory_space<vmem>>, vector<16x32xf32>
    %c0_1 = arith.constant 0 : index
    %c0_2 = arith.constant 0 : index
    %1 = vector.load %arg3[%c0_1, %c0_2] : memref<8x32xf32, #tpu.memory_space<vmem>>, vector<8x32xf32>
    %c0_3 = arith.constant 0 : index
    %c0_4 = arith.constant 0 : index
    %2 = vector.load %arg4[%c0_3, %c0_4] : memref<8x32xf32, #tpu.memory_space<vmem>>, vector<8x32xf32>
    %c0_5 = arith.constant 0 : index
    %c0_6 = arith.constant 0 : index
    %3 = vector.load %arg5[%c0_5, %c0_6] : memref<8x32xf32, #tpu.memory_space<vmem>>, vector<8x32xf32>
    %4 = arith.mulf %2, %2 : vector<8x32xf32>
    %cst = arith.constant dense<0.000000e+00> : vector<8xf32>
    %5 = vector.multi_reduction <add>, %4, %cst [1] : vector<8x32xf32> to vector<8xf32>
    %6 = vector.shape_cast %5 : vector<8xf32> to vector<8x1xf32>
    %7 = math.rsqrt %6 : vector<8x1xf32>
    %8 = vector.broadcast %7 : vector<8x1xf32> to vector<8x32xf32>
    %9 = arith.mulf %2, %8 : vector<8x32xf32>
    %c0_7 = arith.constant 0 : index
    %c0_8 = arith.constant 0 : index
    %10 = vector.load %arg1[%c0_7, %c0_8] : memref<16x3xi32, #tpu.memory_space<vmem>>, vector<16x3xi32>
    %11 = vector.extract_strided_slice %10 {offsets = [0, 0], sizes = [16, 1], strides = [1, 1]} : vector<16x3xi32> to vector<16x1xi32>
    %12 = vector.extract_strided_slice %10 {offsets = [0, 1], sizes = [16, 1], strides = [1, 1]} : vector<16x3xi32> to vector<16x1xi32>
    %13 = vector.extract_strided_slice %10 {offsets = [0, 2], sizes = [16, 1], strides = [1, 1]} : vector<16x3xi32> to vector<16x1xi32>
    %14 = tpu.iota {dimensions = array<i32: 1>} : vector<16x16xi32>
    %15 = tpu.iota {dimensions = array<i32: 1>} : vector<16x8xi32>
    %16 = vector.broadcast %11 : vector<16x1xi32> to vector<16x16xi32>
    %17 = arith.cmpi eq, %16, %14 : vector<16x16xi32>
    %18 = arith.extui %17 : vector<16x16xi1> to vector<16x16xi32>
    %19 = arith.sitofp %18 : vector<16x16xi32> to vector<16x16xf32>
    %20 = vector.broadcast %13 : vector<16x1xi32> to vector<16x16xi32>
    %21 = arith.cmpi eq, %20, %14 : vector<16x16xi32>
    %22 = arith.extui %21 : vector<16x16xi1> to vector<16x16xi32>
    %23 = arith.sitofp %22 : vector<16x16xi32> to vector<16x16xf32>
    %24 = arith.subf %19, %23 : vector<16x16xf32>
    %25 = vector.broadcast %12 : vector<16x1xi32> to vector<16x8xi32>
    %26 = arith.cmpi eq, %25, %15 : vector<16x8xi32>
    %27 = arith.extui %26 : vector<16x8xi1> to vector<16x8xi32>
    %28 = arith.sitofp %27 : vector<16x8xi32> to vector<16x8xf32>
    %cst_9 = arith.constant dense<0.000000e+00> : vector<16x32xf32>
    %29 = tpu.matmul %24, %0, %cst_9 {dimension_numbers = #tpu.dot_dimension_numbers<[1], [0], [0], [1], [0, 0, 1, 1], [], []>, precision = #tpu.contract_precision<fp32>} : vector<16x16xf32>, vector<16x32xf32>, vector<16x32xf32> -> vector<16x32xf32>
    %cst_10 = arith.constant dense<0.000000e+00> : vector<16x32xf32>
    %30 = tpu.matmul %28, %1, %cst_10 {dimension_numbers = #tpu.dot_dimension_numbers<[1], [0], [0], [1], [0, 0, 1, 1], [], []>, precision = #tpu.contract_precision<fp32>} : vector<16x8xf32>, vector<8x32xf32>, vector<16x32xf32> -> vector<16x32xf32>
    %cst_11 = arith.constant dense<0.000000e+00> : vector<16x32xf32>
    %31 = tpu.matmul %28, %9, %cst_11 {dimension_numbers = #tpu.dot_dimension_numbers<[1], [0], [0], [1], [0, 0, 1, 1], [], []>, precision = #tpu.contract_precision<fp32>} : vector<16x8xf32>, vector<8x32xf32>, vector<16x32xf32> -> vector<16x32xf32>
    %32 = arith.addf %29, %30 : vector<16x32xf32>
    %33 = arith.mulf %31, %29 : vector<16x32xf32>
    %34 = vector.extract_strided_slice %32 {offsets = [0, 0], sizes = [8, 32], strides = [1, 1]} : vector<16x32xf32> to vector<8x32xf32>
    %35 = vector.extract_strided_slice %33 {offsets = [0, 0], sizes = [8, 32], strides = [1, 1]} : vector<16x32xf32> to vector<8x32xf32>
    %cst_12 = arith.constant dense<0.000000e+00> : vector<32xf32>
    %36 = vector.multi_reduction <add>, %35, %cst_12 [0] : vector<8x32xf32> to vector<32xf32>
    %37 = vector.shape_cast %36 : vector<32xf32> to vector<1x32xf32>
    %38 = arith.mulf %35, %35 : vector<8x32xf32>
    %cst_13 = arith.constant dense<0.000000e+00> : vector<32xf32>
    %39 = vector.multi_reduction <add>, %38, %cst_13 [0] : vector<8x32xf32> to vector<32xf32>
    %40 = vector.shape_cast %39 : vector<32xf32> to vector<1x32xf32>
    %cst_14 = arith.constant 8.000000e+00 : f32
    %41 = vector.broadcast %cst_14 : f32 to vector<8x32xf32>
    %42 = arith.mulf %41, %34 : vector<8x32xf32>
    %43 = arith.mulf %42, %34 : vector<8x32xf32>
    %cst_15 = arith.constant 2.000000e+00 : f32
    %44 = vector.broadcast %cst_15 : f32 to vector<8x32xf32>
    %45 = arith.mulf %44, %34 : vector<8x32xf32>
    %46 = vector.broadcast %37 : vector<1x32xf32> to vector<8x32xf32>
    %47 = arith.mulf %45, %46 : vector<8x32xf32>
    %48 = arith.subf %43, %47 : vector<8x32xf32>
    %49 = vector.broadcast %40 : vector<1x32xf32> to vector<8x32xf32>
    %50 = arith.addf %48, %49 : vector<8x32xf32>
    %cst_16 = arith.constant 0.000000e+00 : f32
    %51 = vector.broadcast %cst_16 : f32 to vector<8x32xf32>
    %52 = arith.maximumf %50, %51 : vector<8x32xf32>
    %53 = math.sqrt %52 : vector<8x32xf32>
    %54 = vector.extract_strided_slice %32 {offsets = [8, 0], sizes = [8, 32], strides = [1, 1]} : vector<16x32xf32> to vector<8x32xf32>
    %55 = vector.extract_strided_slice %33 {offsets = [8, 0], sizes = [8, 32], strides = [1, 1]} : vector<16x32xf32> to vector<8x32xf32>
    %cst_17 = arith.constant dense<0.000000e+00> : vector<32xf32>
    %56 = vector.multi_reduction <add>, %55, %cst_17 [0] : vector<8x32xf32> to vector<32xf32>
    %57 = vector.shape_cast %56 : vector<32xf32> to vector<1x32xf32>
    %58 = arith.mulf %55, %55 : vector<8x32xf32>
    %cst_18 = arith.constant dense<0.000000e+00> : vector<32xf32>
    %59 = vector.multi_reduction <add>, %58, %cst_18 [0] : vector<8x32xf32> to vector<32xf32>
    %60 = vector.shape_cast %59 : vector<32xf32> to vector<1x32xf32>
    %cst_19 = arith.constant 8.000000e+00 : f32
    %61 = vector.broadcast %cst_19 : f32 to vector<8x32xf32>
    %62 = arith.mulf %61, %54 : vector<8x32xf32>
    %63 = arith.mulf %62, %54 : vector<8x32xf32>
    %cst_20 = arith.constant 2.000000e+00 : f32
    %64 = vector.broadcast %cst_20 : f32 to vector<8x32xf32>
    %65 = arith.mulf %64, %54 : vector<8x32xf32>
    %66 = vector.broadcast %57 : vector<1x32xf32> to vector<8x32xf32>
    %67 = arith.mulf %65, %66 : vector<8x32xf32>
    %68 = arith.subf %63, %67 : vector<8x32xf32>
    %69 = vector.broadcast %60 : vector<1x32xf32> to vector<8x32xf32>
    %70 = arith.addf %68, %69 : vector<8x32xf32>
    %cst_21 = arith.constant 0.000000e+00 : f32
    %71 = vector.broadcast %cst_21 : f32 to vector<8x32xf32>
    %72 = arith.maximumf %70, %71 : vector<8x32xf32>
    %73 = math.sqrt %72 : vector<8x32xf32>
    %74 = arith.subf %53, %73 : vector<8x32xf32>
    %cst_22 = arith.constant 1.000000e+00 : f32
    %75 = vector.broadcast %cst_22 : f32 to vector<8x32xf32>
    %76 = arith.addf %74, %75 : vector<8x32xf32>
    %cst_23 = arith.constant 0.000000e+00 : f32
    %77 = vector.broadcast %cst_23 : f32 to vector<8x32xf32>
    %78 = arith.maximumf %76, %77 : vector<8x32xf32>
    %79 = vector.shape_cast %78 : vector<8x32xf32> to vector<1x8x32xf32>
    %cst_24 = arith.constant dense<0.000000e+00> : vector<1xf32>
    %80 = vector.multi_reduction <add>, %79, %cst_24 [1, 2] : vector<1x8x32xf32> to vector<1xf32>
    %81 = vector.shape_cast %80 : vector<1xf32> to vector<1x1x1xf32>
    %82 = vector.extract %81[0, 0, 0] : f32 from vector<1x1x1xf32>
    %83 = arith.mulf %0, %0 : vector<16x32xf32>
    %cst_25 = arith.constant dense<0.000000e+00> : vector<16xf32>
    %84 = vector.multi_reduction <add>, %83, %cst_25 [1] : vector<16x32xf32> to vector<16xf32>
    %85 = vector.shape_cast %84 : vector<16xf32> to vector<16x1xf32>
    %cst_26 = arith.constant 1.600000e+01 : f32
    %86 = vector.broadcast %cst_26 : f32 to vector<16x1xf32>
    %87 = arith.subf %85, %86 : vector<16x1xf32>
    %88 = math.absf %87 : vector<16x1xf32>
    %89 = vector.shape_cast %88 : vector<16x1xf32> to vector<1x16x1xf32>
    %cst_27 = arith.constant dense<0.000000e+00> : vector<1xf32>
    %90 = vector.multi_reduction <add>, %89, %cst_27 [1, 2] : vector<1x16x1xf32> to vector<1xf32>
    %91 = vector.shape_cast %90 : vector<1xf32> to vector<1x1x1xf32>
    %92 = vector.extract %91[0, 0, 0] : f32 from vector<1x1x1xf32>
    %93 = arith.mulf %9, %3 : vector<8x32xf32>
    %cst_28 = arith.constant dense<0.000000e+00> : vector<8xf32>
    %94 = vector.multi_reduction <add>, %93, %cst_28 [1] : vector<8x32xf32> to vector<8xf32>
    %95 = vector.shape_cast %94 : vector<8xf32> to vector<8x1xf32>
    %96 = arith.mulf %95, %95 : vector<8x1xf32>
    %97 = arith.mulf %3, %3 : vector<8x32xf32>
    %cst_29 = arith.constant dense<0.000000e+00> : vector<8xf32>
    %98 = vector.multi_reduction <add>, %97, %cst_29 [1] : vector<8x32xf32> to vector<8xf32>
    %99 = vector.shape_cast %98 : vector<8xf32> to vector<8x1xf32>
    %100 = arith.divf %96, %99 : vector<8x1xf32>
    %cst_30 = arith.constant 4.000000e-01 : f32
    %101 = vector.broadcast %cst_30 : f32 to vector<8x1xf32>
    %102 = arith.subf %100, %101 : vector<8x1xf32>
    %103 = math.absf %102 : vector<8x1xf32>
    %104 = vector.shape_cast %103 : vector<8x1xf32> to vector<1x8x1xf32>
    %cst_31 = arith.constant dense<0.000000e+00> : vector<1xf32>
    %105 = vector.multi_reduction <add>, %104, %cst_31 [1, 2] : vector<1x8x1xf32> to vector<1xf32>
    %106 = vector.shape_cast %105 : vector<1xf32> to vector<1x1x1xf32>
    %107 = vector.extract %106[0, 0, 0] : f32 from vector<1x1x1xf32>
    %108 = arith.addf %92, %107 : f32
    %cst_32 = arith.constant 5.000000e-02 : f32
    %109 = arith.mulf %cst_32, %108 : f32
    %110 = arith.addf %82, %109 : f32
    %c0_33 = arith.constant 0 : index
    %c0_34 = arith.constant 0 : index
    %111 = memref.load %arg6[%c0_33, %c0_34] : memref<1x1xf32, #tpu.memory_space<smem>>
    memref.store %110, %arg6[%c0_33, %c0_34] : memref<1x1xf32, #tpu.memory_space<smem>>
    return
  }
  func.func @transform_0(%arg0: i32) -> (i32, i32) {
    %c0_i32 = arith.constant 0 : i32
    %c0_i32_0 = arith.constant 0 : i32
    %c0_i32_1 = arith.constant 0 : i32
    return %c0_i32, %c0_i32_0 : i32, i32
  }
  func.func @transform_1(%arg0: i32) -> (i32, i32) {
    %c0_i32 = arith.constant 0 : i32
    %c0_i32_0 = arith.constant 0 : i32
    %c0_i32_1 = arith.constant 0 : i32
    return %c0_i32, %c0_i32_0 : i32, i32
  }
  func.func @transform_2(%arg0: i32) -> (i32, i32) {
    %c0_i32 = arith.constant 0 : i32
    %c0_i32_0 = arith.constant 0 : i32
    %c0_i32_1 = arith.constant 0 : i32
    return %c0_i32, %c0_i32_0 : i32, i32
  }
  func.func @transform_3(%arg0: i32) -> (i32, i32) {
    %c0_i32 = arith.constant 0 : i32
    %c0_i32_0 = arith.constant 0 : i32
    %c0_i32_1 = arith.constant 0 : i32
    return %c0_i32, %c0_i32_0 : i32, i32
  }
  func.func @transform_4(%arg0: i32) -> (i32, i32) {
    %c0_i32 = arith.constant 0 : i32
    %c0_i32_0 = arith.constant 0 : i32
    %c0_i32_1 = arith.constant 0 : i32
    return %c0_i32, %c0_i32_0 : i32, i32
  }
  func.func @transform_5(%arg0: i32) -> (i32, i32) {
    %c0_i32 = arith.constant 0 : i32
    %c0_i32_0 = arith.constant 0 : i32
    %c0_i32_1 = arith.constant 0 : i32
    return %c0_i32, %c0_i32_0 : i32, i32
  }
}

</mosaic_0001>

<bundles_post_ra>
// kernel: transh_forward.1
= control target key start
LH: loop header
LB: loop body
LE: loop exit
PB: predicated region body
PF: predicated region fallthrough
CT: control target
= control target key end

     0   :  { %10 = vsyncpa [#allocation3], 0  ;;  %s2166_s0 = inlined_call_operand.vmem [shape: s32[16,3], index: 0, kind: input, shape index: {}]   ;;  %s2167_s1 = inlined_call_operand.vmem [shape: f32[16,32], index: 1, kind: input, shape index: {}]   ;;  %s2168_s2 = inlined_call_operand.vmem [shape: f32[8,32], index: 2, kind: input, shape index: {}]   ;;  %s2169_s3 = inlined_call_operand.vmem [shape: f32[8,32], index: 3, kind: input, shape index: {}]   ;;  %s2170_s4 = inlined_call_operand.hbm [shape: f32[8,32], index: 4, kind: input, shape index: {}]   ;;  %s2171_s5 = inlined_call_operand.hbm [shape: f32[1,1], index: 5, kind: output, shape index: {}]  }
   0x1   :  { %11 = vsyncpa [#allocation4], 0  ;;  %s1963_s18 = smov [#allocation2]  }
   0x2   :  { %s26_s19 = sshll.u32 %s1963_s18, 4  ;;  %s27_s19 = int_to_ptr.vmem [resolvable:$true] %s26_s19 }
   0x3   :  { %s1939_s20 = scalar_lea.vmem %s27_s19, 128  ;;  %p1944_p1 = scmp.lt.s32.totalorder %s27_s19, %s27_s19 }
   0x4   :  { %p1940_p0 = scmp.ne.s32.totalorder %s27_s19, %s1939_s20  ;;  %p1945_p2 = scmp.lt.s32.totalorder %s1939_s20, %s1939_s20 }
   0x6   :  { %p1946_p3 = por %p1945_p2, %p1944_p1 }
   0x8   :  { %p1947_p4 = pnand %p1946_p3, %p1940_p0 }
   0xa   :  { %1950 = shalt.err (!%p1947_p4)
}
   0xb   :  { %29 = dma.hbm_to_vmem [thread:$0]  %s2170_s4, 128, %s27_s19, [#allocation3]  }
   0xc   :  { %1959 = dma.done.wait [#allocation3], 128  }
   0xd   :  { %1960 = vsyncadd [#allocation3], 4294967168  ;;  %v1964_v0 = vmov 0   ;;  %v46_v1 = vld [vmem:[%s2166_s0 + $0x8] sm:$0xff]  ;;  %v45_v2 = vld [vmem:[%s2166_s0] sm:$0xff]  ;;  %v1965_v9 = vmov 2   ;;  %v47_v25 = vlaneseq }
   0xe   :  { %1920 = vset.pattern.permute.xlu1 %v1964_v0  ;;  %1918 = vset.pattern.permute.xlu0 %v1964_v0  ;;  %v2011_v3 = vld [vmem:[%s2167_s1 + $0x8] sm:$0xff]  ;;  %v33_v4 = vld [vmem:[%s2167_s1] sm:$0xff]  ;;  %v1966_v14 = vmov 1   ;;  %vm39_vm0 = vcmask 261120   ;;  %v1967_v31 = vmov 0.0   ;;  %vm87_vm5 = vcmask 130048  }
   0xf   :  { %53 = vperm.xlu1 %1920, %v46_v1   ;;  %50 = vperm.xlu0 %1918, %v45_v2   ;;  %v2017_v5 = vand.u32 4294901760, %v2011_v3  ;;  %v2019_v6 = vand.u32 4294901760, %v33_v4  ;;  %v2047_v17 = vld [vmem:[%s2169_s3] sm:$0xff]  ;;  %v1656_v23 = vmul.f32 %v33_v4, %v33_v4  ;;  %v48_v26 = vand.u32 127, %v47_v25  ;;  %s1968_s11 = smov [#allocation5]  }
  0x10   :  { %v38_v18 = vmul.f32 %v2047_v17, %v2047_v17  ;;  %v2052_v20 = vld [vmem:[#allocation2] sm:$0xff]  ;;  %vm596_vm6 = vcmask 64512   ;;  %vm1668_vm9 = vcmask 7168  }
  0x11   :  { %v2023_v7 = vsub.f32 %v2011_v3, %v2017_v5  ;;  %v2026_v8 = vsub.f32 %v33_v4, %v2019_v6  ;;  %1804 = vmatprep.subr.mxu0 %v2017_v5  ;;  %v1686_v21 = vmul.f32 %v2052_v20, %v2052_v20  ;;  %v1658_v24 = vsel %vm39_vm0, %v1656_v23, 0.0  ;;  %v35_v29 = vld [vmem:[%s2168_s2] sm:$0xff] }
  0x12   :  { %1805 = vmatpush3.msra.mxu0 %v2017_v5  ;;  %v40_v19 = vsel %vm39_vm0, %v38_v18, 0.0  ;;  %v2061_v30 = vand.u32 4294901760, %v35_v29 }
  0x13   :  { %1921 = vset.pattern.permute.xlu1 %v1965_v9  ;;  %1919 = vset.pattern.permute.xlu0 %v1965_v9  ;;  %v2030_v10 = vand.u32 4294901760, %v2023_v7  ;;  %v2033_v11 = vand.u32 4294901760, %v2026_v8  ;;  %v1687_v22 = vsel %vm39_vm0, %v1686_v21, 0.0 }
  0x14   :  { %65 = vperm.xlu1 %1921, %v46_v1   ;;  %62 = vperm.xlu0 %1919, %v45_v2   ;;  %v2064_v40 = vsub.f32 %v35_v29, %v2061_v30 }
  0x15   :  { %v213_v12 = vsub.f32 %v2023_v7, %v2030_v10  ;;  %v220_v13 = vsub.f32 %v2026_v8, %v2033_v11  ;;  %1806 = vmatprep.subr.mxu0 %v2019_v6 }
  0x16   :  { %1807 = vmatpush3.msra.mxu0 %v2019_v6  ;;  %v2069_v47 = vand.u32 4294901760, %v2064_v40 }
  0x17   :  { %v214_v15 = vand.u32 4294901760, %v213_v12  ;;  %v221_v16 = vand.u32 4294901760, %v220_v13  ;;  %1818 = vmatprep.subr.mxu0 %v2023_v7  ;;  %v1657_v12 = vmul.f32 %v2011_v3, %v2011_v3 }
  0x18   :  { %1922 = vset.pattern.permute.xlu0 %v1966_v14  ;;  %v723_v56 = vsub.f32 %v2064_v40, %v2069_v47 }
  0x19   :  { %76 = vperm.xlu0 %1922, %v45_v2   ;;  %1811 = vmatprep.subr.mxu1 %v214_v15 }
  0x1a   :  { %1812 = vmatpush3.msra.mxu1 %v214_v15  ;;  %v724_v0 = vand.u32 4294901760, %v723_v56 }
  0x1b   :  { %1813 = vmatprep.subr.mxu1 %v221_v16 }
  0x1c   :  { %1814 = vmatpush3.msra.mxu1 %v221_v16  ;;  %v1661_v16 = vsel %vm39_vm0, %v1657_v12, 0.0 }
  0x1d   :  { %79 = vperm.xlu0 %1922, %v46_v1   ;;  %1825 = vmatprep.subr.mxu1 %v2017_v5 }
  0x38   :  { %41 = vadd.xlane.f32.xlu1 %v40_v19 }
  0x3c   :  { %1688 = vadd.xlane.f32.xlu0 %v1687_v22  ;;  %1659 = vadd.xlane.f32.xlu1 %v1658_v24 }
  0x8a   :  { %v54_v27 = vpop.permute.xlu1 %53  ;;  %v51_v28 = vpop.permute.xlu0 %50 }
  0x8b   :  { %vm55_vm1 = vcmp.eq.s32.totalorder %v51_v28, %v48_v26  ;;  %vm56_vm2 = vcmp.eq.s32.totalorder %v54_v27, %v48_v26 }
  0x8c   :  { %v1723_v32 = vsel %vm55_vm1, 1.0, %v1967_v31  ;;  %v1724_v35 = vsel %vm56_vm2, 1.0, %v1967_v31 }
  0x8f   :  { %v66_v33 = vpop.permute.xlu1 %65  ;;  %v63_v34 = vpop.permute.xlu0 %62 }
  0x90   :  { %vm68_vm3 = vcmp.eq.s32.totalorder %v66_v33, %v48_v26  ;;  %vm67_vm4 = vcmp.eq.s32.totalorder %v63_v34, %v48_v26 }
  0x91   :  { %v1726_v36 = vsel %vm68_vm3, 1.0, %v1967_v31  ;;  %v1725_v37 = vsel %vm67_vm4, 1.0, %v1967_v31 }
  0x92   :  { %v74_v38 = vsub.f32 %v1724_v35, %v1726_v36  ;;  %v73_v39 = vsub.f32 %v1723_v32, %v1725_v37 }
  0x94   :  { %v92_v41 = vsel %vm87_vm5, %v74_v38, 0  ;;  %v89_v42 = vsel %vm87_vm5, %v73_v39, 0  ;;  %v77_v43 = vpop.permute.xlu0 %76 }
  0x95   :  { %v171_v44 = vand.u32 4294901760, %v92_v41  ;;  %v161_v45 = vand.u32 4294901760, %v89_v42  ;;  %vm81_vm7 = vcmp.eq.s32.totalorder %v77_v43, %v48_v26 }
  0x96   :  { %v2066_v46 = vsel %vm81_vm7, 1.0, %v1967_v31 }
  0x97   :  { %v172_v48 = vsub.f32 %v92_v41, %v171_v44  ;;  %v162_v49 = vsub.f32 %v89_v42, %v161_v45  ;;  %1815 = vmatprep.mubr.f32.mxu1 %v161_v45  ;;  %v598_v50 = vsel %vm596_vm6, %v2066_v46, 0 }
  0x98   :  { %1816 = vmatmul.mubr.f32.vlgmr.msra.gmra.mxu1 %v171_v44  ;;  %v80_v51 = vpop.permute.xlu0 %79  ;;  %v2074_v54 = vsub.f32 %v598_v50, %v598_v50 }
  0x99   :  { %1826 = vmatpush3.msra.mxu1 %v2017_v5  ;;  %v163_v52 = vand.u32 4294901760, %v162_v49  ;;  %v173_v53 = vand.u32 4294901760, %v172_v48  ;;  %vm82_vm8 = vcmp.eq.s32.totalorder %v80_v51, %v48_v26 }
  0x9a   :  { %1827 = vmatprep.subr.mxu1 %v2019_v6  ;;  %v2077_v55 = vsel %vm82_vm8, 1.0, %v1967_v31  ;;  %v2089_v63 = vand.u32 4294901760, %v2074_v54 }
  0x9b   :  { %1828 = vmatpush3.msra.mxu1 %v2019_v6  ;;  %1829 = vmatprep.mubr.f32.mxu1 %v163_v52  ;;  %v164_v57 = vsub.f32 %v162_v49, %v163_v52  ;;  %v601_v58 = vsel %vm596_vm6, %v2077_v55, 0  ;;  %v174_v59 = vsub.f32 %v172_v48, %v173_v53 }
  0x9c   :  { %1830 = vmatmul.mubr.f32.vlgmr.msra.gmra.mxu1 %v173_v53  ;;  %1839 = vmatprep.subr.mxu1 %v2017_v5  ;;  %v2085_v60 = vsub.f32 %v601_v58, %v601_v58  ;;  %v672_v2 = vsub.f32 %v2074_v54, %v2089_v63 }
  0x9d   :  { %1840 = vmatpush3.msra.mxu1 %v2017_v5  ;;  %v165_v61 = vand.u32 4294901760, %v164_v57  ;;  %1843 = vmatprep.mubr.f32.mxu1 %v161_v45  ;;  %v175_v62 = vand.u32 4294901760, %v174_v59 }
  0x9e   :  { %1841 = vmatprep.subr.mxu1 %v2019_v6  ;;  %v2094_v1 = vand.u32 4294901760, %v2085_v60  ;;  %v673_v5 = vand.u32 4294901760, %v672_v2 }
  0x9f   :  { %1808 = vmatprep.mubr.f32.mxu0 %v165_v61  ;;  %1842 = vmatpush3.msra.mxu1 %v2019_v6 }
  0xa0   :  { %1809 = vmatmul.mubr.f32.vlgmr.msra.gmra.mxu0 %v175_v62  ;;  %1844 = vmatmul.mubr.f32.vlgmr.msra.gmra.mxu1 %v171_v44  ;;  %v682_v4 = vsub.f32 %v2085_v60, %v2094_v1 }
  0xa1   :  { %1819 = vmatpush3.msra.mxu0 %v2023_v7  ;;  %1822 = vmatprep.mubr.f32.mxu0 %v162_v49 }
  0xa2   :  { %1820 = vmatprep.subr.mxu0 %v2026_v8  ;;  %1851 = vmatprep.subr.mxu1 %v724_v0  ;;  %v683_v6 = vand.u32 4294901760, %v682_v4 }
  0xa3   :  { %1821 = vmatpush3.msra.mxu0 %v2026_v8  ;;  %1852 = vmatpush3.msra.mxu1 %v724_v0 }
  0xa4   :  { %1823 = vmatmul.mubr.f32.vlgmr.msra.gmra.mxu0 %v172_v48  ;;  %1832 = vmatprep.subr.mxu0 %v2030_v10 }
  0xa5   :  { %1833 = vmatpush3.msra.mxu0 %v2030_v10  ;;  %1836 = vmatprep.mubr.f32.mxu0 %v161_v45 }
  0xa6   :  { %1834 = vmatprep.subr.mxu0 %v2033_v11  ;;  %1853 = vmatprep.mubr.msk.f32.mxu1 %vm596_vm6, %v2066_v46 }
  0xa7   :  { %1835 = vmatpush3.msra.mxu0 %v2033_v11  ;;  %1854 = vmatmul.mubr.msk.f32.vlgmr.msra.gmra.mxu1 %vm596_vm6, %v2077_v55 }
  0xa8   :  { %1837 = vmatmul.mubr.f32.vlgmr.msra.gmra.mxu0 %v171_v44  ;;  %1846 = vmatprep.subr.mxu0 %v2061_v30 }
  0xa9   :  { %1847 = vmatpush3.msra.mxu0 %v2061_v30  ;;  %1848 = vmatprep.mubr.f32.mxu0 %v673_v5 }
  0xaa   :  { %1856 = vmatprep.subr.mxu0 %v2064_v40  ;;  %1861 = vmatprep.subr.mxu1 %v2061_v30 }
  0xab   :  { %1862 = vmatpush3.msra.mxu1 %v2061_v30  ;;  %1863 = vmatprep.mubr.f32.mxu1 %v2089_v63 }
  0xac   :  { %1849 = vmatmul.mubr.f32.vlgmr.msra.gmra.mxu0 %v683_v6  ;;  %1864 = vmatmul.mubr.f32.vlgmr.msra.gmra.mxu1 %v2094_v1 }
  0xad   :  { %1857 = vmatpush3.msra.mxu0 %v2064_v40  ;;  %1858 = vmatprep.mubr.f32.mxu0 %v2074_v54 }
  0xae   :  { %1866 = vmatprep.subr.mxu0 %v2069_v47  ;;  %1871 = vmatprep.subr.mxu1 %v2061_v30 }
  0xaf   :  { %1872 = vmatpush3.msra.mxu1 %v2061_v30  ;;  %1873 = vmatprep.mubr.msk.f32.mxu1 %vm596_vm6, %v2066_v46 }
  0xb0   :  { %1859 = vmatmul.mubr.f32.vlgmr.msra.gmra.mxu0 %v2085_v60  ;;  %1874 = vmatmul.mubr.msk.f32.vlgmr.msra.gmra.mxu1 %vm596_vm6, %v2077_v55 }
  0xb1   :  { %1867 = vmatpush3.msra.mxu0 %v2069_v47  ;;  %1868 = vmatprep.mubr.msk.f32.mxu0 %vm596_vm6, %v2066_v46 }
  0xb2   :  { %1883 = vmatprep.mubr.msk.f32.mxu1 %vm596_vm6, %v2066_v46 }
  0xb4   :  { %1869 = vmatmul.mubr.msk.f32.vlgmr.msra.gmra.mxu0 %vm596_vm6, %v2077_v55 }
  0xb5   :  { %1878 = vmatprep.mubr.f32.mxu0 %v673_v5 }
  0xc1   :  { %v42_v7 = vpop.xlane.xlu1 %41 }
  0xc2   :  { %1923 = vrsqrt.f32 %v42_v7 }
  0xc5   :  { %v1689_v18 = vpop.xlane.xlu0 %1688  ;;  %v1660_v19 = vpop.xlane.xlu1 %1659 }
  0xc6   :  { %1925 = vrcp.f32 %v1689_v18  ;;  %v1741_v21 = vadd.f32 -16.0, %v1660_v19 }
  0xc8   :  { %v1666_v25 = vand.u32 2147483647, %v1741_v21 }
  0xca   :  { %v1669_v31 = vsel %vm1668_vm9, %v1666_v25, 0.0 }
  0xcf   :  { %v1924_v8 = vpop.eup %1923 }
  0xd0   :  { %v44_v9 = vmul.f32 %v1924_v8, %v2047_v17 }
  0xd2   :  { %v1123_v10 = vand.u32 4294901760, %v44_v9  ;;  %v1681_v11 = vmul.f32 %v44_v9, %v2052_v20 }
  0xd3   :  { %v1926_v20 = vpop.eup %1925 }
  0xd4   :  { %1876 = vmatprep.subr.mxu0 %v1123_v10  ;;  %v1682_v13 = vsel %vm39_vm0, %v1681_v11, 0.0  ;;  %v1210_v14 = vsub.f32 %v44_v9, %v1123_v10 }
  0xd5   :  { %1683 = vadd.xlane.f32.xlu1 %v1682_v13  ;;  %1877 = vmatpush3.msra.mxu0 %v1123_v10 }
  0xd6   :  { %1879 = vmatmul.mubr.f32.vlgmr.msra.gmra.mxu0 %v683_v6  ;;  %1886 = vmatprep.subr.mxu0 %v1210_v14  ;;  %v1211_v15 = vand.u32 4294901760, %v1210_v14 }
  0xd7   :  { %1887 = vmatpush3.msra.mxu0 %v1210_v14  ;;  %1888 = vmatprep.mubr.f32.mxu0 %v2074_v54 }
  0xd8   :  { %1896 = vmatprep.subr.mxu0 %v1211_v15  ;;  %v1212_v17 = vsub.f32 %v1210_v14, %v1211_v15 }
  0xd9   :  { %1662 = vadd.xlane.f32.xlu1 %v1661_v16 }
  0xda   :  { %1889 = vmatmul.mubr.f32.vlgmr.msra.gmra.mxu0 %v2085_v60  ;;  %v1213_v3 = vand.u32 4294901760, %v1212_v17 }
  0xdb   :  { %1897 = vmatpush3.msra.mxu0 %v1211_v15  ;;  %1898 = vmatprep.mubr.msk.f32.mxu0 %vm596_vm6, %v2066_v46 }
  0xdc   :  { %1881 = vmatprep.subr.mxu1 %v1213_v3 }
  0xdd   :  { %1882 = vmatpush3.msra.mxu1 %v1213_v3 }
  0xde   :  { %1884 = vmatmul.mubr.msk.f32.vlgmr.msra.gmra.mxu1 %vm596_vm6, %v2077_v55  ;;  %1891 = vmatprep.subr.mxu1 %v1123_v10 }
  0xdf   :  { %1899 = vmatmul.mubr.msk.f32.vlgmr.msra.gmra.mxu0 %vm596_vm6, %v2077_v55  ;;  %1892 = vmatpush3.msra.mxu1 %v1123_v10 }
  0xe0   :  { %1893 = vmatprep.mubr.f32.mxu1 %v2089_v63  ;;  %1901 = vmatprep.subr.mxu1 %v1123_v10 }
  0xe2   :  { %1894 = vmatmul.mubr.f32.vlgmr.msra.gmra.mxu1 %v2094_v1 }
  0xe3   :  { %1902 = vmatpush3.msra.mxu1 %v1123_v10  ;;  %1903 = vmatprep.mubr.msk.f32.mxu1 %vm596_vm6, %v2066_v46 }
  0xe6   :  { %1904 = vmatmul.mubr.msk.f32.vlgmr.msra.gmra.mxu1 %vm596_vm6, %v2077_v55 }
 0x158   :  { %v1817_v38 = vpop.f32.mrf.mxu1 }
 0x15a   :  { %v258_v40 = vpop.f32.mrf.mxu1 }
 0x15c   :  { %v1831_v42 = vpop.f32.mrf.mxu1 }
 0x15e   :  { %v1684_v22 = vpop.xlane.xlu1 %1683  ;;  %v422_v44 = vpop.f32.mrf.mxu1 }
 0x15f   :  { %v1685_v23 = vmul.f32 %v1684_v22, %v1684_v22 }
 0x160   :  { %v1810_v33 = vpop.f32.mrf.mxu0  ;;  %v1845_v46 = vpop.f32.mrf.mxu1 }
 0x161   :  { %v1691_v24 = vmul.f32 %v1926_v20, %v1685_v23  ;;  %v265_v60 = vadd.f32 %v1817_v38, %v1810_v33 }
 0x162   :  { %v1663_v26 = vpop.xlane.xlu1 %1662  ;;  %v167_v36 = vpop.f32.mrf.mxu0 }
 0x163   :  { %v1743_v27 = vadd.f32 -0.4, %v1691_v24  ;;  %v1742_v28 = vadd.f32 -16.0, %v1663_v26  ;;  %v586_v48 = vpop.f32.mrf.mxu1  ;;  %v259_v62 = vadd.f32 %v258_v40, %v167_v36 }
 0x164   :  { %v1824_v37 = vpop.f32.mrf.mxu0 }
 0x165   :  { %v1693_v29 = vand.u32 2147483647, %v1743_v27  ;;  %v1667_v30 = vand.u32 2147483647, %v1742_v28  ;;  %v348_v63 = vadd.f32 %v1824_v37, %v265_v60 }
 0x166   :  { %v340_v39 = vpop.f32.mrf.mxu0 }
 0x167   :  { %v2155_v32 = vsel %vm1668_vm9, %v1693_v29, 0.0  ;;  %v1670_v34 = vsel %vm1668_vm9, %v1667_v30, 0.0  ;;  %v1855_v49 = vpop.f32.mrf.mxu1  ;;  %v341_v2 = vadd.f32 %v340_v39, %v259_v62  ;;  %v431_v7 = vadd.f32 %v1831_v42, %v348_v63 }
 0x168   :  { %v1671_v35 = vadd.f32 %v1670_v34, %v1669_v31  ;;  %v1838_v41 = vpop.f32.mrf.mxu0 }
 0x169   :  { %v761_v51 = vpop.f32.mrf.mxu1  ;;  %v423_v11 = vadd.f32 %v422_v44, %v341_v2  ;;  %v514_v17 = vadd.f32 %v1838_v41, %v431_v7 }
 0x16a   :  { %1672 = vadd.xlane.f32.xlu1 %v1671_v35  ;;  %v507_v43 = vpop.f32.mrf.mxu0 }
 0x16b   :  { %v508_v21 = vadd.f32 %v507_v43, %v423_v11  ;;  %v593_v27 = vadd.f32 %v1845_v46, %v514_v17 }
 0x16c   :  { %v1850_v45 = vpop.f32.mrf.mxu0  ;;  %v1865_v53 = vpop.f32.mrf.mxu1 }
 0x16d   :  { %v768_v0 = vadd.f32 %v1855_v49, %v1850_v45  ;;  %v587_v33 = vadd.f32 %v586_v48, %v508_v21 }
 0x16e   :  { %v675_v47 = vpop.f32.mrf.mxu0  ;;  %v922_v55 = vpop.f32.mrf.mxu1 }
 0x16f   :  { %v762_v4 = vadd.f32 %v761_v51, %v675_v47 }
 0x170   :  { %v1860_v50 = vpop.f32.mrf.mxu0  ;;  %v1875_v58 = vpop.f32.mrf.mxu1 }
 0x171   :  { %v849_v8 = vadd.f32 %v1860_v50, %v768_v0 }
 0x172   :  { %v841_v52 = vpop.f32.mrf.mxu0  ;;  %v1082_v1 = vpop.f32.mrf.mxu1 }
 0x173   :  { %v842_v12 = vadd.f32 %v841_v52, %v762_v4  ;;  %v931_v3 = vadd.f32 %v1865_v53, %v849_v8 }
 0x174   :  { %v1870_v54 = vpop.f32.mrf.mxu0 }
 0x175   :  { %v923_v22 = vadd.f32 %v922_v55, %v842_v12  ;;  %v1011_v28 = vadd.f32 %v1870_v54, %v931_v3 }
 0x176   :  { %v1004_v56 = vpop.f32.mrf.mxu0 }
 0x177   :  { %v1005_v34 = vadd.f32 %v1004_v56, %v923_v22  ;;  %v1089_v37 = vadd.f32 %v1875_v58, %v1011_v28 }
 0x179   :  { %v1083_v42 = vadd.f32 %v1082_v1, %v1005_v34  ;;  %v1582_v50 = vadd.f32 %v1089_v37, %v593_v27 }
 0x17b   :  { %v1581_v55 = vadd.f32 %v1083_v42, %v587_v33  ;;  %v1629_v60 = vmul.f32 8.0, %v1582_v50  ;;  %v1631_v1 = vmul.f32 2.0, %v1582_v50 }
 0x17d   :  { %v1600_v2 = vmul.f32 8.0, %v1581_v55  ;;  %v1630_v8 = vmul.f32 %v1629_v60, %v1582_v50 }
 0x196   :  { %v1880_v57 = vpop.f32.mrf.mxu0 }
 0x198   :  { %v1164_v59 = vpop.f32.mrf.mxu0 }
 0x19a   :  { %v1890_v61 = vpop.f32.mrf.mxu0 }
 0x19c   :  { %v1330_v5 = vpop.f32.mrf.mxu0 }
 0x19e   :  { %v1885_v6 = vpop.f32.mrf.mxu1 }
 0x19f   :  { %v1257_v9 = vadd.f32 %v1885_v6, %v1880_v57  ;;  %v1900_v15 = vpop.f32.mrf.mxu0 }
 0x1a0   :  { %v1250_v10 = vpop.f32.mrf.mxu1 }
 0x1a1   :  { %v1251_v13 = vadd.f32 %v1250_v10, %v1164_v59  ;;  %v1338_v14 = vadd.f32 %v1890_v61, %v1257_v9  ;;  %v1493_v25 = vpop.f32.mrf.mxu0  ;;  %v1602_v9 = vmul.f32 2.0, %v1581_v55 }
 0x1a2   :  { %v1895_v16 = vpop.f32.mrf.mxu1 }
 0x1a3   :  { %v1420_v18 = vadd.f32 %v1895_v16, %v1338_v14  ;;  %v1331_v19 = vadd.f32 %v1330_v5, %v1251_v13  ;;  %v1601_v13 = vmul.f32 %v1600_v2, %v1581_v55 }
 0x1a4   :  { %v1411_v20 = vpop.f32.mrf.mxu1 }
 0x1a5   :  { %v1412_v23 = vadd.f32 %v1411_v20, %v1331_v19  ;;  %v1500_v24 = vadd.f32 %v1900_v15, %v1420_v18 }
 0x1a6   :  { %v1905_v26 = vpop.f32.mrf.mxu1 }
 0x1a7   :  { %v1578_v29 = vadd.f32 %v1905_v26, %v1500_v24  ;;  %v1494_v30 = vadd.f32 %v1493_v25, %v1412_v23 }
 0x1a8   :  { %v1571_v31 = vpop.f32.mrf.mxu1 }
 0x1a9   :  { %v1584_v35 = vmul.f32 %v1578_v29, %v593_v27  ;;  %v1572_v36 = vadd.f32 %v1571_v31, %v1494_v30 }
 0x1ab   :  { %v1614_v38 = vsel %vm39_vm0, %v1584_v35, 0.0  ;;  %v1621_v39 = vmul.f32 %v1584_v35, %v1584_v35  ;;  %v1583_v40 = vmul.f32 %v1572_v36, %v587_v33 }
 0x1ac   :  { %v1615_v41 = vrot.slane %v1614_v38, 4 }
 0x1ad   :  { %v1622_v43 = vsel %vm39_vm0, %v1621_v39, 0.0  ;;  %v1585_v44 = vsel %vm39_vm0, %v1583_v40, 0.0  ;;  %v1592_v45 = vmul.f32 %v1583_v40, %v1583_v40 }
 0x1ae   :  { %v1616_v46 = vadd.f32 %v1615_v41, %v1614_v38  ;;  %v1623_v47 = vrot.slane %v1622_v43, 4  ;;  %v1586_v49 = vrot.slane %v1585_v44, 4 }
 0x1af   :  { %v1593_v48 = vsel %vm39_vm0, %v1592_v45, 0.0 }
 0x1b0   :  { %v1617_v51 = vrot.slane %v1616_v46, 2  ;;  %v1624_v52 = vadd.f32 %v1623_v47, %v1622_v43  ;;  %v1587_v53 = vadd.f32 %v1586_v49, %v1585_v44  ;;  %v1594_v54 = vrot.slane %v1593_v48, 4 }
 0x1b2   :  { %v1618_v56 = vadd.f32 %v1617_v51, %v1616_v46  ;;  %v1625_v57 = vrot.slane %v1624_v52, 2  ;;  %v1588_v58 = vrot.slane %v1587_v53, 2  ;;  %v1595_v59 = vadd.f32 %v1594_v54, %v1593_v48 }
 0x1b4   :  { %v1619_v61 = vrot.slane %v1618_v56, 1  ;;  %v1626_v62 = vadd.f32 %v1625_v57, %v1624_v52  ;;  %v1589_v63 = vadd.f32 %v1588_v58, %v1587_v53  ;;  %v1596_v0 = vrot.slane %v1595_v59, 2 }
 0x1b6   :  { %v1620_v4 = vadd.f32 %v1619_v61, %v1618_v56  ;;  %v1627_v5 = vrot.slane %v1626_v62, 1  ;;  %v1590_v6 = vrot.slane %v1589_v63, 1  ;;  %v1597_v7 = vadd.f32 %v1596_v0, %v1595_v59 }
 0x1b8   :  { %v1632_v10 = vmul.f32 %v1631_v1, %v1620_v4  ;;  %v1591_v11 = vadd.f32 %v1590_v6, %v1589_v63  ;;  %v1598_v12 = vrot.slane %v1597_v7, 1  ;;  %v1628_v14 = vadd.f32 %v1627_v5, %v1626_v62 }
 0x1ba   :  { %v1633_v15 = vsub.f32 %v1630_v8, %v1632_v10  ;;  %v1603_v16 = vmul.f32 %v1602_v9, %v1591_v11  ;;  %v1599_v3 = vadd.f32 %v1598_v12, %v1597_v7 }
 0x1bc   :  { %v1634_v17 = vadd.f32 %v1633_v15, %v1628_v14  ;;  %v1604_v18 = vsub.f32 %v1601_v13, %v1603_v16 }
 0x1be   :  { %v1635_v19 = vmax.f32 %v1634_v17, 0.0  ;;  %v1605_v20 = vadd.f32 %v1604_v18, %v1599_v3 }
 0x1c0   :  { %v1606_v21 = vmax.f32 %v1605_v20, 0.0  ;;  %1927 = vrsqrt.f32 %v1635_v19  ;;  %vm1638_vm10 = vcmp.eq.f32.partialorder %v1635_v19, inf  ;;  %v1641_v28 = vand.u32 2147483648, %v1635_v19 }
 0x1c1   :  { %vm1640_vm13 = vcmp.eq.f32.partialorder %v1635_v19, 0.0 }
 0x1c2   :  { %1929 = vrsqrt.f32 %v1606_v21  ;;  %vm1609_vm11 = vcmp.eq.f32.partialorder %v1606_v21, inf  ;;  %v1612_v27 = vand.u32 2147483648, %v1606_v21  ;;  %vm1611_vm12 = vcmp.eq.f32.partialorder %v1606_v21, 0.0 }
 0x1cd   :  { %v1928_v22 = vpop.eup %1927 }
 0x1ce   :  { %v1637_v23 = vmul.f32 %v1928_v22, %v1635_v19 }
 0x1cf   :  { %v1930_v24 = vpop.eup %1929 }
 0x1d0   :  { %v1608_v25 = vmul.f32 %v1930_v24, %v1606_v21  ;;  %v1639_v26 = vsel %vm1638_vm10, %v1635_v19, %v1637_v23 }
 0x1d1   :  { %v1642_v31 = vsel %vm1640_vm13, %v1641_v28, %v1639_v26 }
 0x1d2   :  { %v1610_v29 = vsel %vm1609_vm11, %v1606_v21, %v1608_v25 }
 0x1d3   :  { %v1613_v30 = vsel %vm1611_vm12, %v1612_v27, %v1610_v29 }
 0x1d4   :  { %v1643_v33 = vsub.f32 %v1613_v30, %v1642_v31 }
 0x1d6   :  { %v1644_v34 = vadd.f32 1.0, %v1643_v33 }
 0x1d8   :  { %v1645_v35 = vmax.f32 %v1644_v34, 0.0 }
 0x1da   :  { %v1646_v36 = vsel %vm39_vm0, %v1645_v35, 0.0 }
 0x1db   :  { %1647 = vadd.xlane.f32.xlu0 %v1646_v36 }
 0x1df   :  { %1695 = vadd.xlane.f32.xlu0 %v2155_v32 }
 0x1f3   :  { %v1673_v37 = vpop.xlane.xlu1 %1672 }
 0x1f4   :  { %v1674_v38 = vrot.slane %v1673_v37, 4 }
 0x1f6   :  { %v1675_v39 = vadd.f32 %v1674_v38, %v1673_v37 }
 0x1f8   :  { %v1676_v40 = vrot.slane %v1675_v39, 2 }
 0x1fa   :  { %v1677_v44 = vadd.f32 %v1676_v40, %v1675_v39 }
 0x1fc   :  { %v1678_v48 = vrot.slane %v1677_v44, 1 }
 0x1fe   :  { %v1679_v55 = vadd.f32 %v1678_v48, %v1677_v44 }
 0x264   :  { %v1648_v41 = vpop.xlane.xlu0 %1647 }
 0x265   :  { %v1649_v42 = vrot.slane %v1648_v41, 4 }
 0x267   :  { %v1650_v43 = vadd.f32 %v1649_v42, %v1648_v41 }
 0x268   :  { %v1696_v45 = vpop.xlane.xlu0 %1695 }
 0x269   :  { %v1651_v46 = vrot.slane %v1650_v43, 2  ;;  %v1697_v47 = vrot.slane %v1696_v45, 4 }
 0x26b   :  { %v1698_v49 = vadd.f32 %v1697_v47, %v1696_v45  ;;  %v1652_v50 = vadd.f32 %v1651_v46, %v1650_v43 }
 0x26d   :  { %v1699_v51 = vrot.slane %v1698_v49, 2  ;;  %v1653_v52 = vrot.slane %v1652_v50, 1 }
 0x26f   :  { %v1700_v53 = vadd.f32 %v1699_v51, %v1698_v49  ;;  %v1654_v54 = vadd.f32 %v1653_v52, %v1652_v50 }
 0x271   :  { %1906 = vpush %v1654_v54  ;;  %v1701_v32 = vrot.slane %v1700_v53, 1 }
 0x272   :  { %1908 = vpush %v1679_v55 }
 0x273   :  { %v1702_v56 = vadd.f32 %v1701_v32, %v1700_v53 }
 0x275   :  { %1910 = vpush %v1702_v56 }
 0x2a2   :  { %s1907_s2 = spop %1906 }
 0x2a3   :  { %s1909_s6 = spop %1908 }
 0x2a6   :  { %s1911_s7 = spop %1910 }
 0x2a7   :  { %s1704_s8 = sadd.f32 %s1911_s7, %s1909_s6 }
 0x2a9   :  { %s1705_s9 = smul.f32 0.05, %s1704_s8 }
 0x2ab   :  { %s1706_s10 = sadd.f32 %s1907_s2, %s1705_s9 }
 0x2ad   :  { %1708 = sst [smem:[#allocation5]] %s1706_s10 }
 0x2ae   :  { %1716 = dma.smem_to_hbm %s1968_s11, 16, %s2171_s5, [#allocation4]  }
 0x2af   :  { %1961 = dma.done.wait [#allocation4], 16  }
 0x2b0   :  { %1962 = vsyncadd [#allocation4], 4294967280 }
 0x2b1   :  { %1720 = sfence }
 0x2b2   :  { %1721 = vsyncpa [#allocation3], 1 }
 0x2b3   :  { %1722 = vsyncpa [#allocation4], 1 }

</bundles_post_ra>
